<compile_context>
chip_gen: v7x
topology: tpu7x:2x2x1
jax: 0.10.0
libtpu: 0.0.40
codegen_flags: <defaults>
</compile_context>

<pallas_src>
import functools

import jax
import jax.numpy as jnp
from jax.experimental import pallas as pl
from jax.experimental.pallas import tpu as pltpu


def _find_pad_size(in_shape: int) -> int:
    # Mirrors Padding.findPadSize: pad is derived from the constructor argument
    # `in_shape`, exactly like the PyTorch module — not from x.shape.
    if in_shape < 256:
        return (256 - in_shape) // 2
    return 0


def _pad_kernel(x_ref, o_ref, *, pad: int, H: int, W: int):
    # 1) Zero-fill the whole output tile: a single unmasked, lane-dense splat
    #    store (no (Bnc, pad, Wo) / (Bnc, H, pad) zero temporaries).
    o_ref[...] = jnp.zeros_like(o_ref)
    # 2) Overwrite only the small center window with the input.  The center is
    #    a tiny fraction of the tile, so the zero-then-overwrite cost is
    #    negligible and no cross-lane data movement is needed.
    o_ref[:, pl.ds(pad, H), pl.ds(pad, W)] = x_ref[...]


def _choose_bnc(NC: int, out_plane_bytes: int, in_plane_bytes: int,
                target_bytes: int = 4 << 20) -> int:
    """Largest divisor of NC whose block fits ~target_bytes, while keeping the
    grid length >= min(NC, 4) and preferring an even grid (v7x dual-TC)."""
    per_plane = max(1, out_plane_bytes + in_plane_bytes)
    max_planes = max(1, target_bytes // per_plane)
    min_steps = min(NC, 4)   # >=4 steps when possible: pipelining + megacore
    best = 1
    best_even = None
    for d in range(1, NC + 1):
        if NC % d:
            continue
        steps = NC // d
        if d <= max_planes and steps >= min_steps:
            if d > best:
                best = d
            if steps % 2 == 0 and (best_even is None or d > best_even):
                best_even = d
    return best_even if best_even is not None else best


def zero_pad2d(x: jax.Array, in_shape: int) -> jax.Array:
    """Equivalent of nn.ZeroPad2d(findPadSize(in_shape)) applied to NCHW x."""
    pad = _find_pad_size(in_shape)
    if pad == 0:
        # Pure identity: skip the kernel entirely (no HBM round trip).
        return x

    N, C, H, W = x.shape
    Ho, Wo = H + 2 * pad, W + 2 * pad
    NC = N * C

    # Fuse N and C: pure data movement, so fewer/bigger grid steps win.
    x2 = x.reshape(NC, H, W)

    itemsize = jnp.dtype(x.dtype).itemsize
    bnc = _choose_bnc(NC, Ho * Wo * itemsize, H * W * itemsize)
    grid = (NC // bnc,)

    kernel = functools.partial(_pad_kernel, pad=pad, H=H, W=W)

    total_bytes = (NC * H * W + NC * Ho * Wo) * itemsize

    out2 = pl.pallas_call(
        kernel,
        out_shape=jax.ShapeDtypeStruct((NC, Ho, Wo), x.dtype),
        grid=grid,
        in_specs=[pl.BlockSpec((bnc, H, W), lambda i: (i, 0, 0))],
        out_specs=pl.BlockSpec((bnc, Ho, Wo), lambda i: (i, 0, 0)),
        compiler_params=pltpu.CompilerParams(
            # Independent plane blocks -> megacore sharding on v7x.
            dimension_semantics=("parallel",),
            # Safe on all generations (v5e default is only 16 MiB scoped);
            # double-buffered blocks stay well below this.
            vmem_limit_bytes=32 * 1024 * 1024,
        ),
        cost_estimate=pl.CostEstimate(
            flops=0, transcendentals=0, bytes_accessed=total_bytes),
    )(x2)

    return out2.reshape(N, C, Ho, Wo)


class PaddingPallas:
    """JAX/Pallas port of the PyTorch `Padding` module (no parameters)."""

    def __init__(self, in_shape: int):
        self.in_shape = in_shape
        self.pad = _find_pad_size(in_shape)

    def __call__(self, x: jax.Array) -> jax.Array:
        return zero_pad2d(x, self.in_shape)


if __name__ == "__main__":
    key = jax.random.PRNGKey(0)
    # Small spatial input (16x16) -> pad_size = (256 - 16) // 2 = 120,
    # output spatial = 256x256, matching nn.ZeroPad2d semantics exactly.
    N, C, H, W = 2, 4, 16, 16
    x = jax.random.normal(key, (N, C, H, W), dtype=jnp.float32)

    module = PaddingPallas(in_shape=H)
    out = module(x)
    out = jax.block_until_ready(out)

    # Reference check against jnp.pad (same semantics as nn.ZeroPad2d).
    p = module.pad
    ref = jnp.pad(x, ((0, 0), (0, 0), (p, p), (p, p)))
    assert out.shape == (N, C, H + 2 * p, W + 2 * p), out.shape
    assert out.dtype == x.dtype
    assert jnp.array_equal(out, ref), "Pallas padding mismatch vs reference"

    # Also exercise the pad == 0 (in_shape >= 256) fast path (no kernel launch).
    x_big = jax.random.normal(key, (1, 2, 256, 256), dtype=jnp.float32)
    out_big = jax.block_until_ready(PaddingPallas(in_shape=256)(x_big))
    assert jnp.array_equal(out_big, x_big), "pad==0 path mismatch"

    # A case with awkward NC factorization (NC = 3) to exercise block selection.
    x_odd = jax.random.normal(key, (1, 3, 20, 20), dtype=jnp.float32)
    out_odd = jax.block_until_ready(PaddingPallas(in_shape=20)(x_odd))
    p_odd = _find_pad_size(20)
    ref_odd = jnp.pad(x_odd, ((0, 0), (0, 0), (p_odd, p_odd), (p_odd, p_odd)))
    assert jnp.array_equal(out_odd, ref_odd), "odd-NC padding mismatch"

    print("KERNEL_OK")
</pallas_src>

<mosaic_0001>
module attributes {stable_mosaic.version = 11 : i64} {
  func.func @_pad_kernel(%arg0: i32, %arg1: memref<2x16x16xf32, #tpu.memory_space<vmem>>, %arg2: memref<2x256x256xf32, #tpu.memory_space<vmem>>) attributes {dimension_semantics = [#tpu.dimension_semantics<parallel>], iteration_bounds = array<i64: 4>, scalar_prefetch = 0 : i64, scratch_operands = 0 : i64, tpu.core_type = #tpu.core_type<tc>, window_params = [{transform_indices = @transform_0, window_bounds = array<i64: 2, 16, 16>}, {transform_indices = @transform_1, window_bounds = array<i64: 2, 256, 256>}]} {
    %cst = arith.constant 0.000000e+00 : f32
    %0 = vector.broadcast %cst : f32 to vector<2x256x256xf32>
    %c0 = arith.constant 0 : index
    %c0_0 = arith.constant 0 : index
    %c0_1 = arith.constant 0 : index
    %1 = vector.load %arg2[%c0, %c0_0, %c0_1] : memref<2x256x256xf32, #tpu.memory_space<vmem>>, vector<2x256x256xf32>
    tpu.vector_store %arg2[%c0, %c0_0, %c0_1], %0 {strides = array<i32>} : memref<2x256x256xf32, #tpu.memory_space<vmem>>, vector<2x256x256xf32>,
    %c0_2 = arith.constant 0 : index
    %c0_3 = arith.constant 0 : index
    %c0_4 = arith.constant 0 : index
    %2 = vector.load %arg1[%c0_2, %c0_3, %c0_4] : memref<2x16x16xf32, #tpu.memory_space<vmem>>, vector<2x16x16xf32>
    %c0_5 = arith.constant 0 : index
    %c120 = arith.constant 120 : index
    %c120_6 = arith.constant 120 : index
    %3 = vector.load %arg2[%c0_5, %c120, %c120_6] : memref<2x256x256xf32, #tpu.memory_space<vmem>>, vector<2x16x16xf32>
    tpu.vector_store %arg2[%c0_5, %c120, %c120_6], %2 {strides = array<i32>} : memref<2x256x256xf32, #tpu.memory_space<vmem>>, vector<2x16x16xf32>,
    return
  }
  func.func @transform_0(%arg0: i32) -> (i32, i32, i32) {
    %c0_i32 = arith.constant 0 : i32
    %c0_i32_0 = arith.constant 0 : i32
    %c0_i32_1 = arith.constant 0 : i32
    return %arg0, %c0_i32, %c0_i32_0 : i32, i32, i32
  }
  func.func @transform_1(%arg0: i32) -> (i32, i32, i32) {
    %c0_i32 = arith.constant 0 : i32
    %c0_i32_0 = arith.constant 0 : i32
    %c0_i32_1 = arith.constant 0 : i32
    return %arg0, %c0_i32, %c0_i32_0 : i32, i32, i32
  }
}

</mosaic_0001>

<bundles_post_ra>
// kernel: tpu_custom_call.1
= control target key start
LH: loop header
LB: loop body
LE: loop exit
PB: predicated region body
PF: predicated region fallthrough
CT: control target
= control target key end

     0   :  { %6 = vsyncpa [#allocation3], 0  ;;  %s1014_s0 = inlined_call_operand.hbm [shape: f32[8,16,16], index: 0, kind: input, shape index: {}]   ;;  %s1015_s1 = inlined_call_operand.hbm [shape: f32[8,256,256], index: 1, kind: output, shape index: {}]  }
   0x1   :  { %8 = vsyncpa [#allocation3 + $0x1], 0 }
   0x2   :  { %9 = vsyncpa [#allocation4], 0 }
   0x3   :  { %11 = vsyncpa [#allocation4 + $0x1], 0  ;;  %s572_s6 = smov 0   ;;  %s574_s7 = smov 0  }
   0x4   :  { %s576_s8 = smov 0   ;;  %s578_s9 = smov 0  }
   0x5 LB: > { %s593_s10 = sadd.s32 4294967295, %s552_s9   ;;  %s384_s11 = sadd.s32 4294967294, %s552_s9   ;;  %s552_s9 = sphi %s578_s9, %s1027_s9   ;;  %s548_s8 = sphi %s576_s8, %s1026_s8   ;;  %s544_s7 = sphi %s574_s7, %s1025_s7   ;;  %s540_s6 = sphi %s572_s6, %s1024_s6  }
   0x6   : > { %s597_s12 = sadd.s32 1, %s552_s9   ;;  %s24_s13 = sadd.s32 1, %s548_s8 }
   0x7   : > { %s21_s14 = ssub.s32 %s552_s9, %s597_s12  ;;  %p31_p0 = scmp.ne.s32.totalorder %s548_s8, %s544_s7 }
   0x8   : > { %p22_p1 = scmp.eq.s32.totalorder %s21_s14, 0  ;;  %p32_p2 = scmp.eq.s32.totalorder %s552_s9, 0 }
   0x9   : > { %p37_p3 = scmp.ne.s32.totalorder %s544_s7, %s540_s6  ;;  %p38_p4 = scmp.eq.s32.totalorder %s593_s10, 0 }
   0xa   : > { %s609_s15 = scalar_select %p22_p1, %s548_s8, %s24_s13  }
   0xb   : > { %p611_p5 = por %p32_p2, %p31_p0  ;;  %p615_p6 = por %p38_p4, %p37_p3 }
   0xc   : > { %p61_p7 = scmp.eq.s32.totalorder %s593_s10, 3  ;;  %p67_p8 = scmp.eq.s32.totalorder %s384_s11, 3 }
   0xd   : > { %p416_p9 = scmp.lt.s32.totalorder %s552_s9, 4  ;;  %s87_s20 = sand.u32 1, %s548_s8  }
   0xe   : > { %p621_p10 = por %p61_p7, %p31_p0  ;;  %p625_p11 = por %p67_p8, %p37_p3 }
   0xf   : > { %s401_s21 = sshll.u32 %s552_s9, 9  ;;  %s387_s22 = sshll.u32 %s87_s20, 5 }
  0x10   : > { %s1019_s18 = scalar_select %p621_p10, 1, 0 }
  0x11   : > { %s1020_s19 = scalar_select %p625_p11, 1, 0 }
  0x12   : > { %s634_s25 = scalar_lea.hbm %s1014_s0, %s401_s21  ;;  %s91_s26 = scalar_lea.vmem [#allocation2], %s387_s22 }
  0x13   : > { %s99_s27 = sshll.u32 %s91_s26, 4  ;;  %p638_p12 = pnand %p416_p9, %p611_p5  ;;  %s642_s27 = int_to_ptr.vmem [resolvable:$true] %s99_s27 }
  0x14   : > { %s644_s29 = scalar_lea.sflag [#allocation3], %s87_s20  ;;  %s456_s30 = scalar_lea.hbm %s634_s25, 512 }
  0x15   : > { %p457_p13 = scmp.ne.s32.totalorder %s634_s25, %s456_s30  ;;  %p458_p0 = pneg %p638_p12 }
  0x16   : > { %s461_s4 = scalar_lea.hbm %s1014_s0, 2048  ;;  %p462_p3 = scmp.lt.u32.totalorder %s634_s25, %s1014_s0 }
  0x17   : > { %p459_p1 = pnand %p458_p0, %p457_p13  ;;  %p463_p4 = scmp.lt.u32.totalorder %s461_s4, %s456_s30 }
  0x18   : > { %p465_p7 = scmp.lt.u32.totalorder %s456_s30, %s634_s25 }
  0x19   : > { %p460_p2 = pneg %p459_p1  ;;  %p464_p5 = por %p463_p4, %p462_p3 }
  0x1b   : > { %p466_p8 = por %p465_p7, %p464_p5 }
  0x1d   : > { %p467_p9 = pnand %p466_p8, %p460_p2 }
  0x1f   : > { %470 = shalt.err (!%p467_p9)
}
  0x20   : > { %s471_s13 = scalar_lea.vmem %s642_s27, 512  ;;  %s554_s14 = smov [#allocation2]  }
  0x21   : > { %p472_p13 = scmp.ne.s32.totalorder %s642_s27, %s471_s13  ;;  %s476_s16 = sshll.u32 %s554_s14, 4  ;;  %s477_s16 = int_to_ptr.vmem [resolvable:$false] %s476_s16 }
  0x22   : > { %s478_s20 = scalar_lea.vmem %s477_s16, 1024  ;;  %p479_p10 = scmp.lt.s32.totalorder %s642_s27, %s477_s16 }
  0x23   : > { %p474_p1 = pnand %p472_p13, %p458_p0  ;;  %p480_p3 = scmp.lt.s32.totalorder %s478_s20, %s471_s13 }
  0x25   : > { %p475_p11 = pneg %p474_p1  ;;  %p481_p4 = por %p480_p3, %p479_p10 }
  0x27   : > { %p482_p5 = pnand %p481_p4, %p475_p11 }
  0x29   : > { %485 = shalt.err (!%p482_p5)
}
  0x2a   : > { %s555_s21 = smov 128   ;;  %s556_s22 = smov 8  }
  0x2b   : > { %411 = dma.hbm_to_vmem [thread:$0]  (!%p638_p12), %s634_s25, 512, %s642_s27, %s644_s29, %s555_s21, %s555_s21, %s556_s22  }
  0x2c   : > { %p391_p0 = scmp.ge.s32.totalorder %s552_s9, 1  ;;  %p107_p2 = scmp.lt.s32.totalorder %s552_s9, 5 }
  0x2e   : > { %p108_p7 = pnand %p391_p0, %p107_p2 }
  0x2f   : > { %s675_s23 = sand.u32 (!%p108_p7), 1, %s544_s7  }
  0x30   : > { %111 = sbr.rel (%p108_p7) target bundleno = 192 (0xc0), region = 24  ;;  %s392_s24 = sshll.u32 (!%p108_p7), %s675_s23, 5 }
  0x31   : > { %s114_s26 = scalar_lea.sflag (!%p108_p7), [#allocation3], %s675_s23  ;;  %s679_s30 = scalar_lea.vmem (!%p108_p7), [#allocation2], %s392_s24 }
  0x37   : > { %531 = dma.done.wait (%p615_p6), %s114_s26, 512  }
  0x38   : > { %533 = vsyncadd (%p615_p6), %s114_s26, 4294966784  ;;  %s393_s25 = sshll.u32 %s675_s23, 10  ;;  %v557_v0 = vmov 0.0   ;;  %v268_v1 = vld [vmem:[%s679_s30 + $0x10] sm:$0xff]  ;;  %v266_v2 = vld [vmem:[%s679_s30] sm:$0xff]  ;;  %s558_s17 = smov 120  }
  0x39   : > { %s686_s27 = scalar_lea.vmem [#allocation5], %s393_s25  ;;  %278 = vrot.lane.b32.xlu1 %v268_v1, %s558_s17  ;;  %274 = vrot.lane.b32.xlu0 %v266_v2, %s558_s17  ;;  %v269_v3 = vld [vmem:[%s679_s30 + $0x18] sm:$0xff]  ;;  %v267_v4 = vld [vmem:[%s679_s30 + $0x8] sm:$0xff]  ;;  %vm286_vm0 = vcmask 1048512   ;;  %vm288_vm1 = vcmask 64512   ;;  %s403_s28 = sshll.u32 %s593_s10, 14 }
  0x3a   : > { %232 = vst [vmem:[%s686_s27 + $0x2f0] sm:$0xff] %v557_v0  ;;  %233 = vst [vmem:[%s686_s27 + $0x2f8] sm:$0xff] %v557_v0  ;;  %s311_s29 = sshll.u32 %s686_s27, 4  ;;  %s961_s4 = scalar_lea.hbm %s1015_s1, %s403_s28  ;;  %s963_s29 = int_to_ptr.vmem [resolvable:$true] %s311_s29 }
  0x3b   : > { %138 = vst [vmem:[%s686_s27] sm:$0xff] %v557_v0  ;;  %139 = vst [vmem:[%s686_s27 + $0x8] sm:$0xff] %v557_v0  ;;  %s297_s10 = scalar_lea.sflag [#allocation4], %s675_s23  ;;  %s486_s5 = scalar_lea.vmem %s963_s29, 16384 }
  0x3c   : > { %140 = vst [vmem:[%s686_s27 + $0x10] sm:$0xff] %v557_v0  ;;  %141 = vst [vmem:[%s686_s27 + $0x18] sm:$0xff] %v557_v0  ;;  %p487_p6 = scmp.ne.s32.totalorder %s963_s29, %s486_s5  ;;  %p1022_p10 = scmp.ne.s32.totalorder %s1019_s18, 0 }
  0x3d   : > { %142 = vst [vmem:[%s686_s27 + $0x20] sm:$0xff] %v557_v0  ;;  %143 = vst [vmem:[%s686_s27 + $0x28] sm:$0xff] %v557_v0  ;;  %280 = vrot.lane.b32.xlu1 %v269_v3, %s558_s17  ;;  %276 = vrot.lane.b32.xlu0 %v267_v4, %s558_s17  ;;  %s559_s11 = smov [#allocation5]  }
  0x3e   : > { %144 = vst [vmem:[%s686_s27 + $0x30] sm:$0xff] %v557_v0  ;;  %145 = vst [vmem:[%s686_s27 + $0x38] sm:$0xff] %v557_v0  ;;  %p488_p11 = pnand %p487_p6, %p1022_p10  ;;  %s490_s13 = sshll.u32 %s559_s11, 4  ;;  %s491_s13 = int_to_ptr.vmem [resolvable:$false] %s490_s13 }
  0x3f   : > { %146 = vst [vmem:[%s686_s27 + $0x40] sm:$0xff] %v557_v0  ;;  %147 = vst [vmem:[%s686_s27 + $0x48] sm:$0xff] %v557_v0  ;;  %s492_s14 = scalar_lea.vmem %s491_s13, 32768  ;;  %p493_p8 = scmp.lt.s32.totalorder %s963_s29, %s491_s13 }
  0x40   : > { %148 = vst [vmem:[%s686_s27 + $0x50] sm:$0xff] %v557_v0  ;;  %149 = vst [vmem:[%s686_s27 + $0x58] sm:$0xff] %v557_v0  ;;  %p489_p12 = pneg %p488_p11  ;;  %p494_p9 = scmp.lt.s32.totalorder %s492_s14, %s486_s5 }
  0x41   : > { %150 = vst [vmem:[%s686_s27 + $0x60] sm:$0xff] %v557_v0  ;;  %151 = vst [vmem:[%s686_s27 + $0x68] sm:$0xff] %v557_v0 }
  0x42   : > { %152 = vst [vmem:[%s686_s27 + $0x70] sm:$0xff] %v557_v0  ;;  %153 = vst [vmem:[%s686_s27 + $0x78] sm:$0xff] %v557_v0  ;;  %p495_p13 = por %p494_p9, %p493_p8 }
  0x43   : > { %154 = vst [vmem:[%s686_s27 + $0x80] sm:$0xff] %v557_v0  ;;  %155 = vst [vmem:[%s686_s27 + $0x88] sm:$0xff] %v557_v0 }
  0x44   : > { %156 = vst [vmem:[%s686_s27 + $0x90] sm:$0xff] %v557_v0  ;;  %157 = vst [vmem:[%s686_s27 + $0x98] sm:$0xff] %v557_v0  ;;  %p496_p1 = pnand %p495_p13, %p489_p12 }
  0x45   : > { %158 = vst [vmem:[%s686_s27 + $0xa0] sm:$0xff] %v557_v0  ;;  %159 = vst [vmem:[%s686_s27 + $0xa8] sm:$0xff] %v557_v0 }
  0x46   : > { %160 = vst [vmem:[%s686_s27 + $0xb0] sm:$0xff] %v557_v0  ;;  %161 = vst [vmem:[%s686_s27 + $0xb8] sm:$0xff] %v557_v0 }
  0x47   : > { %162 = vst [vmem:[%s686_s27 + $0xc0] sm:$0xff] %v557_v0  ;;  %163 = vst [vmem:[%s686_s27 + $0xc8] sm:$0xff] %v557_v0 }
  0x48   : > { %164 = vst [vmem:[%s686_s27 + $0xd0] sm:$0xff] %v557_v0  ;;  %165 = vst [vmem:[%s686_s27 + $0xd8] sm:$0xff] %v557_v0 }
  0x49   : > { %166 = vst [vmem:[%s686_s27 + $0xe0] sm:$0xff] %v557_v0  ;;  %167 = vst [vmem:[%s686_s27 + $0xe8] sm:$0xff] %v557_v0 }
  0x4a   : > { %168 = vst [vmem:[%s686_s27 + $0xf0] sm:$0xff] %v557_v0  ;;  %169 = vst [vmem:[%s686_s27 + $0xf8] sm:$0xff] %v557_v0 }
  0x4b   : > { %170 = vst [vmem:[%s686_s27 + $0x100] sm:$0xff] %v557_v0  ;;  %171 = vst [vmem:[%s686_s27 + $0x108] sm:$0xff] %v557_v0 }
  0x4c   : > { %172 = vst [vmem:[%s686_s27 + $0x110] sm:$0xff] %v557_v0  ;;  %173 = vst [vmem:[%s686_s27 + $0x118] sm:$0xff] %v557_v0 }
  0x4d   : > { %174 = vst [vmem:[%s686_s27 + $0x120] sm:$0xff] %v557_v0  ;;  %175 = vst [vmem:[%s686_s27 + $0x128] sm:$0xff] %v557_v0 }
  0x4e   : > { %176 = vst [vmem:[%s686_s27 + $0x130] sm:$0xff] %v557_v0  ;;  %177 = vst [vmem:[%s686_s27 + $0x138] sm:$0xff] %v557_v0 }
  0x4f   : > { %178 = vst [vmem:[%s686_s27 + $0x140] sm:$0xff] %v557_v0  ;;  %179 = vst [vmem:[%s686_s27 + $0x148] sm:$0xff] %v557_v0 }
  0x50   : > { %180 = vst [vmem:[%s686_s27 + $0x150] sm:$0xff] %v557_v0  ;;  %181 = vst [vmem:[%s686_s27 + $0x158] sm:$0xff] %v557_v0 }
  0x51   : > { %182 = vst [vmem:[%s686_s27 + $0x160] sm:$0xff] %v557_v0  ;;  %183 = vst [vmem:[%s686_s27 + $0x168] sm:$0xff] %v557_v0 }
  0x52   : > { %184 = vst [vmem:[%s686_s27 + $0x170] sm:$0xff] %v557_v0  ;;  %185 = vst [vmem:[%s686_s27 + $0x178] sm:$0xff] %v557_v0 }
  0x53   : > { %186 = vst [vmem:[%s686_s27 + $0x180] sm:$0xff] %v557_v0  ;;  %187 = vst [vmem:[%s686_s27 + $0x188] sm:$0xff] %v557_v0 }
  0x54   : > { %188 = vst [vmem:[%s686_s27 + $0x190] sm:$0xff] %v557_v0  ;;  %189 = vst [vmem:[%s686_s27 + $0x198] sm:$0xff] %v557_v0 }
  0x55   : > { %190 = vst [vmem:[%s686_s27 + $0x1a0] sm:$0xff] %v557_v0  ;;  %191 = vst [vmem:[%s686_s27 + $0x1a8] sm:$0xff] %v557_v0 }
  0x56   : > { %192 = vst [vmem:[%s686_s27 + $0x1b0] sm:$0xff] %v557_v0  ;;  %193 = vst [vmem:[%s686_s27 + $0x1b8] sm:$0xff] %v557_v0 }
  0x57   : > { %194 = vst [vmem:[%s686_s27 + $0x1c0] sm:$0xff] %v557_v0  ;;  %195 = vst [vmem:[%s686_s27 + $0x1c8] sm:$0xff] %v557_v0 }
  0x58   : > { %196 = vst [vmem:[%s686_s27 + $0x1d0] sm:$0xff] %v557_v0  ;;  %197 = vst [vmem:[%s686_s27 + $0x1d8] sm:$0xff] %v557_v0 }
  0x59   : > { %198 = vst [vmem:[%s686_s27 + $0x1e0] sm:$0xff] %v557_v0  ;;  %199 = vst [vmem:[%s686_s27 + $0x1e8] sm:$0xff] %v557_v0 }
  0x5a   : > { %200 = vst [vmem:[%s686_s27 + $0x1f0] sm:$0xff] %v557_v0  ;;  %201 = vst [vmem:[%s686_s27 + $0x1f8] sm:$0xff] %v557_v0 }
  0x5b   : > { %202 = vst [vmem:[%s686_s27 + $0x200] sm:$0xff] %v557_v0  ;;  %203 = vst [vmem:[%s686_s27 + $0x208] sm:$0xff] %v557_v0 }
  0x5c   : > { %204 = vst [vmem:[%s686_s27 + $0x210] sm:$0xff] %v557_v0  ;;  %205 = vst [vmem:[%s686_s27 + $0x218] sm:$0xff] %v557_v0 }
  0x5d   : > { %206 = vst [vmem:[%s686_s27 + $0x220] sm:$0xff] %v557_v0  ;;  %207 = vst [vmem:[%s686_s27 + $0x228] sm:$0xff] %v557_v0 }
  0x5e   : > { %208 = vst [vmem:[%s686_s27 + $0x230] sm:$0xff] %v557_v0  ;;  %209 = vst [vmem:[%s686_s27 + $0x238] sm:$0xff] %v557_v0 }
  0x5f   : > { %210 = vst [vmem:[%s686_s27 + $0x240] sm:$0xff] %v557_v0  ;;  %211 = vst [vmem:[%s686_s27 + $0x248] sm:$0xff] %v557_v0 }
  0x60   : > { %212 = vst [vmem:[%s686_s27 + $0x250] sm:$0xff] %v557_v0  ;;  %213 = vst [vmem:[%s686_s27 + $0x258] sm:$0xff] %v557_v0 }
  0x61   : > { %214 = vst [vmem:[%s686_s27 + $0x260] sm:$0xff] %v557_v0  ;;  %215 = vst [vmem:[%s686_s27 + $0x268] sm:$0xff] %v557_v0 }
  0x62   : > { %216 = vst [vmem:[%s686_s27 + $0x270] sm:$0xff] %v557_v0  ;;  %217 = vst [vmem:[%s686_s27 + $0x278] sm:$0xff] %v557_v0 }
  0x63   : > { %218 = vst [vmem:[%s686_s27 + $0x280] sm:$0xff] %v557_v0  ;;  %219 = vst [vmem:[%s686_s27 + $0x288] sm:$0xff] %v557_v0 }
  0x64   : > { %220 = vst [vmem:[%s686_s27 + $0x290] sm:$0xff] %v557_v0  ;;  %221 = vst [vmem:[%s686_s27 + $0x298] sm:$0xff] %v557_v0 }
  0x65   : > { %222 = vst [vmem:[%s686_s27 + $0x2a0] sm:$0xff] %v557_v0  ;;  %223 = vst [vmem:[%s686_s27 + $0x2a8] sm:$0xff] %v557_v0 }
  0x66   : > { %224 = vst [vmem:[%s686_s27 + $0x2b0] sm:$0xff] %v557_v0  ;;  %225 = vst [vmem:[%s686_s27 + $0x2b8] sm:$0xff] %v557_v0 }
  0x67   : > { %226 = vst [vmem:[%s686_s27 + $0x2c0] sm:$0xff] %v557_v0  ;;  %227 = vst [vmem:[%s686_s27 + $0x2c8] sm:$0xff] %v557_v0 }
  0x68   : > { %228 = vst [vmem:[%s686_s27 + $0x2d0] sm:$0xff] %v557_v0  ;;  %229 = vst [vmem:[%s686_s27 + $0x2d8] sm:$0xff] %v557_v0 }
  0x69   : > { %230 = vst [vmem:[%s686_s27 + $0x2e0] sm:$0xff] %v557_v0  ;;  %231 = vst [vmem:[%s686_s27 + $0x2e8] sm:$0xff] %v557_v0 }
  0x6a   : > { %234 = vst [vmem:[%s686_s27 + $0x300] sm:$0xff] %v557_v0  ;;  %235 = vst [vmem:[%s686_s27 + $0x308] sm:$0xff] %v557_v0 }
  0x6b   : > { %236 = vst [vmem:[%s686_s27 + $0x310] sm:$0xff] %v557_v0  ;;  %237 = vst [vmem:[%s686_s27 + $0x318] sm:$0xff] %v557_v0 }
  0x6c   : > { %238 = vst [vmem:[%s686_s27 + $0x320] sm:$0xff] %v557_v0  ;;  %239 = vst [vmem:[%s686_s27 + $0x328] sm:$0xff] %v557_v0 }
  0x6d   : > { %240 = vst [vmem:[%s686_s27 + $0x330] sm:$0xff] %v557_v0  ;;  %241 = vst [vmem:[%s686_s27 + $0x338] sm:$0xff] %v557_v0 }
  0x6e   : > { %242 = vst [vmem:[%s686_s27 + $0x340] sm:$0xff] %v557_v0  ;;  %243 = vst [vmem:[%s686_s27 + $0x348] sm:$0xff] %v557_v0 }
  0x6f   : > { %244 = vst [vmem:[%s686_s27 + $0x350] sm:$0xff] %v557_v0  ;;  %245 = vst [vmem:[%s686_s27 + $0x358] sm:$0xff] %v557_v0 }
  0x70   : > { %246 = vst [vmem:[%s686_s27 + $0x360] sm:$0xff] %v557_v0  ;;  %247 = vst [vmem:[%s686_s27 + $0x368] sm:$0xff] %v557_v0 }
  0x71   : > { %248 = vst [vmem:[%s686_s27 + $0x370] sm:$0xff] %v557_v0  ;;  %249 = vst [vmem:[%s686_s27 + $0x378] sm:$0xff] %v557_v0 }
  0x72   : > { %250 = vst [vmem:[%s686_s27 + $0x380] sm:$0xff] %v557_v0  ;;  %251 = vst [vmem:[%s686_s27 + $0x388] sm:$0xff] %v557_v0 }
  0x73   : > { %252 = vst [vmem:[%s686_s27 + $0x390] sm:$0xff] %v557_v0  ;;  %253 = vst [vmem:[%s686_s27 + $0x398] sm:$0xff] %v557_v0 }
  0x74   : > { %254 = vst [vmem:[%s686_s27 + $0x3a0] sm:$0xff] %v557_v0  ;;  %255 = vst [vmem:[%s686_s27 + $0x3a8] sm:$0xff] %v557_v0 }
  0x75   : > { %256 = vst [vmem:[%s686_s27 + $0x3b0] sm:$0xff] %v557_v0  ;;  %257 = vst [vmem:[%s686_s27 + $0x3b8] sm:$0xff] %v557_v0 }
  0x76   : > { %258 = vst [vmem:[%s686_s27 + $0x3c0] sm:$0xff] %v557_v0  ;;  %259 = vst [vmem:[%s686_s27 + $0x3c8] sm:$0xff] %v557_v0 }
  0x77   : > { %260 = vst [vmem:[%s686_s27 + $0x3d0] sm:$0xff] %v557_v0  ;;  %261 = vst [vmem:[%s686_s27 + $0x3d8] sm:$0xff] %v557_v0 }
  0x78   : > { %262 = vst [vmem:[%s686_s27 + $0x3e0] sm:$0xff] %v557_v0  ;;  %263 = vst [vmem:[%s686_s27 + $0x3e8] sm:$0xff] %v557_v0 }
  0x79   : > { %264 = vst [vmem:[%s686_s27 + $0x3f0] sm:$0xff] %v557_v0  ;;  %265 = vst [vmem:[%s686_s27 + $0x3f8] sm:$0xff] %v557_v0 }
  0xab   : > { %v279_v5 = vpop.permute.xlu1 %278  ;;  %v275_v6 = vpop.permute.xlu0 %274 }
  0xac   : > { %292 = vst.msk [vmem:[%s686_s27 + $0x2f0] sm:$0xff] %vm286_vm0, %v279_v5  ;;  %287 = vst.msk [vmem:[%s686_s27 + $0xf0] sm:$0xff] %vm286_vm0, %v275_v6 }
  0xad   : > { %293 = vst.msk [vmem:[%s686_s27 + $0x2f8] sm:$0xff] %vm288_vm1, %v279_v5  ;;  %289 = vst.msk [vmem:[%s686_s27 + $0xf8] sm:$0xff] %vm288_vm1, %v275_v6 }
  0xaf   : > { %v281_v7 = vpop.permute.xlu1 %280  ;;  %v277_v8 = vpop.permute.xlu0 %276 }
  0xb0   : > { %294 = vst.msk [vmem:[%s686_s27 + $0x300] sm:$0xff] %vm286_vm0, %v281_v7  ;;  %290 = vst.msk [vmem:[%s686_s27 + $0x100] sm:$0xff] %vm286_vm0, %v277_v8 }
  0xb1   : > { %295 = vst.msk [vmem:[%s686_s27 + $0x308] sm:$0xff] %vm288_vm1, %v281_v7  ;;  %291 = vst.msk [vmem:[%s686_s27 + $0x108] sm:$0xff] %vm288_vm1, %v277_v8 }
  0xb2   : > { %499 = shalt.err (!%p496_p1)
}
  0xb3   : > { %s500_s16 = scalar_lea.hbm %s961_s4, 16384  ;;  %s504_s22 = scalar_lea.hbm %s1015_s1, 65536 }
  0xb4   : > { %p501_p3 = scmp.ne.s32.totalorder %s961_s4, %s500_s16  ;;  %p505_p0 = scmp.lt.u32.totalorder %s961_s4, %s1015_s1 }
  0xb5   : > { %p506_p2 = scmp.lt.u32.totalorder %s504_s22, %s500_s16  ;;  %p508_p6 = scmp.lt.u32.totalorder %s500_s16, %s961_s4 }
  0xb6   : > { %p502_p4 = pnand %p501_p3, %p1022_p10 }
  0xb7   : > { %p507_p7 = por %p506_p2, %p505_p0 }
  0xb8   : > { %p503_p5 = pneg %p502_p4 }
  0xb9   : > { %p509_p11 = por %p508_p6, %p507_p7 }
  0xbb   : > { %p510_p12 = pnand %p509_p11, %p503_p5 }
  0xbd   : > { %513 = shalt.err (!%p510_p12)
}
  0xbe   : > { %s560_s30 = smov 256   ;;  %s561_s25 = smov 16  }
  0xbf   : > { %406 = dma.vmem_to_hbm [thread:$0]  (%p1022_p10), %s963_s29, 16384, %s961_s4, %s297_s10, %s560_s30, %s560_s30, %s561_s25  }
  0xc0 PF: > { %p417_p8 = scmp.ge.s32.totalorder %s552_s9, 2  ;;  %s326_s27 = sand.u32 1, %s540_s6  }
  0xc1   : > { %p1023_p9 = scmp.ne.s32.totalorder %s1020_s19, 0  ;;  %s327_s17 = scalar_lea.sflag [#allocation4], %s326_s27 }
  0xc3   : > { %p413_p13 = pnand %p417_p8, %p1023_p9 }
  0xc5   : > { %535 = dma.done.wait (!%p413_p13), %s327_s17, 16384  }
  0xc6   : > { %537 = vsyncadd (!%p413_p13), %s327_s17, 4294950912  ;;  %p14_p1 = scmp.ge.s32.totalorder %s597_s12, 6   ;;  %s1024_s6 = smov %s544_s7 }
  0xc7   : > { %s1025_s7 = smov %s548_s8  ;;  %s1026_s8 = smov %s609_s15 }
  0xc8   : > { %s1027_s9 = smov %s597_s12  ;;  %16 = sbr.rel (!%p14_p1) target bundleno = 5 (0x5), region = 69 }
  0xcf   :  { %332 = vsyncpa [#allocation3], 1 }
  0xd0   :  { %334 = vsyncpa [#allocation3 + $0x1], 1 }
  0xd1   :  { %335 = vsyncpa [#allocation4], 1 }
  0xd2   :  { %337 = vsyncpa [#allocation4 + $0x1], 1 }

</bundles_post_ra>
